<compile_context>
chip_gen: v6e
topology: v6e:2x2x1
jax: 0.10.0
libtpu: 0.0.40
codegen_flags: <defaults>
</compile_context>

<pallas_src>
import functools

import jax
import jax.numpy as jnp
from jax.experimental import pallas as pl
from jax.experimental.pallas import tpu as pltpu

_FC4_CHUNK = 1024  # rows per fc4 reduce/relayout/store chunk on large tiles


def _round_up(n, m):
    return ((n + m - 1) // m) * m


def _mlp_kernel(x_ref,
                w1_ref, b1_ref,
                w2_ref, b2_ref,
                w3_ref, b3_ref,
                w4_ref, b4_ref,
                o_ref,
                *, compute_dtype):
    """One (TB, input_dim) row tile of the batch.

    fc1/fc2/fc3: MXU matmuls (compute_dtype operands, f32 accumulation),
                 bias-add + ReLU in f32.  Dropout is identity (eval mode).
    fc4:         N == 1, so it runs on the VPU/XLU (mul + lane-reduce) and the
                 result is written lane-dense as a (1, TB) tile, in 1024-row
                 chunks when TB is large.
    """
    x = x_ref[...].astype(compute_dtype)      # cast on the VPU, under the DMA shadow

    # fc1 -> ReLU
    h = jnp.dot(x, w1_ref[...], preferred_element_type=jnp.float32) + b1_ref[...]
    h = jnp.maximum(h, 0.0)

    # fc2 -> ReLU
    h = jnp.dot(h.astype(compute_dtype), w2_ref[...],
                preferred_element_type=jnp.float32) + b2_ref[...]
    h = jnp.maximum(h, 0.0)

    # fc3 -> ReLU
    h = jnp.dot(h.astype(compute_dtype), w3_ref[...],
                preferred_element_type=jnp.float32) + b3_ref[...]
    h = jnp.maximum(h, 0.0)                    # (TB, 32) f32

    # fc4 -> sigmoid, written lane-dense.  Chunk the reduce + sublane->lane
    # relayout + store on big tiles to bound XLU / vreg scratch live ranges.
    tb = o_ref.shape[-1]
    chunk = _FC4_CHUNK if (tb > _FC4_CHUNK and tb % _FC4_CHUNK == 0) else tb
    w4 = w4_ref[...]                           # (1, 32) f32
    b4 = b4_ref[...]                           # (1, 1)  f32
    for c in range(tb // chunk):               # static, tiny trip count
        hc = h[c * chunk:(c + 1) * chunk, :]
        z = jnp.sum(hc * w4, axis=-1).reshape(1, chunk) + b4
        o_ref[:, pl.ds(c * chunk, chunk)] = jax.nn.sigmoid(z).astype(o_ref.dtype)


def _choose_tile(batch, block_rows, min_grid_steps):
    """Pick (tile_rows, n_tiles).

    Small batches get a single right-sized tile (rounded up to 16 rows, so at
    most 15 pad rows).  Larger batches use 128-row-aligned tiles of at most
    `block_rows`, split into at least `min_grid_steps` tiles when each tile
    would still hold >= 1024 rows (keeps both v7x TensorCores busy while still
    amortizing per-grid-step overhead).
    """
    b16 = _round_up(batch, 16)
    want_split = min_grid_steps > 1 and b16 >= 1024 * min_grid_steps
    if not want_split and b16 <= block_rows:
        return b16, 1                          # one tile; block == full padded array
    n = max(min_grid_steps if want_split else 1, pl.cdiv(b16, block_rows))
    tb = _round_up(pl.cdiv(batch, n), 128)     # multiple of 128: unmasked lane-dense stores
    return tb, pl.cdiv(batch, tb)


def nba_point_model_forward(x, params, *, block_rows=2048, min_grid_steps=2,
                            use_bf16=True):
    """Forward pass of NBAPointModel.

    x:      (B, input_dim) float32.
    params: w{1..4} with shape (in, out) (transposed vs torch), b{1..4} of (1, out).
    block_rows:     max rows per grid step (sweep 1024/2048/4096; multiple of 128).
    min_grid_steps: minimum grid steps for large batches (2 feeds both v7x
                    TensorCores; harmless on single-TC v5e/v6e).
    use_bf16:       bf16 MXU operands with f32 accumulation (default / fast);
                    pass False for f32-exact parity with the torch model.
    """
    B, D = x.shape
    TB, n_tiles = _choose_tile(B, block_rows, min_grid_steps)
    B_pad = TB * n_tiles
    if B_pad != B:                              # small tail pad only
        x = jnp.pad(x, ((0, B_pad - B), (0, 0)))

    compute_dtype = jnp.bfloat16 if use_bf16 else jnp.float32

    # Params are ~60 KB total: cast the MXU-layer weights once in the wrapper
    # and keep everything whole-array VMEM-resident (single copy, no rotation).
    w1 = params["w1"].astype(compute_dtype)
    w2 = params["w2"].astype(compute_dtype)
    w3 = params["w3"].astype(compute_dtype)
    b1 = params["b1"].astype(jnp.float32)
    b2 = params["b2"].astype(jnp.float32)
    b3 = params["b3"].astype(jnp.float32)
    w4 = params["w4"].reshape(1, -1).astype(jnp.float32)   # fc4 runs on the VPU
    b4 = params["b4"].reshape(1, 1).astype(jnp.float32)
    param_args = (w1, b1, w2, b2, w3, b3, w4, b4)
    param_bytes = sum(int(p.size) * p.dtype.itemsize for p in param_args)

    vmem_spec = pl.BlockSpec(memory_space=pltpu.MemorySpace.VMEM)

    cost = pl.CostEstimate(
        flops=2 * B_pad * (D * 128 + 128 * 64 + 64 * 32 + 32 * 1),
        transcendentals=B_pad,                       # one sigmoid per row
        bytes_accessed=B_pad * D * 4 + B_pad * 4 + param_bytes,
    )

    out = pl.pallas_call(
        functools.partial(_mlp_kernel, compute_dtype=compute_dtype),
        out_shape=jax.ShapeDtypeStruct((1, B_pad), jnp.float32),
        grid=(n_tiles,),
        in_specs=[
            pl.BlockSpec((TB, D), lambda i: (i, 0)),   # x: pipelined f32 row tile
            vmem_spec, vmem_spec,                      # w1, b1 (VMEM-resident)
            vmem_spec, vmem_spec,                      # w2, b2
            vmem_spec, vmem_spec,                      # w3, b3
            vmem_spec, vmem_spec,                      # w4, b4
        ],
        out_specs=pl.BlockSpec((1, TB), lambda i: (0, i)),  # lane-dense output tile
        compiler_params=pltpu.CompilerParams(
            dimension_semantics=("parallel",),   # shard row tiles across TCs (v7x)
            vmem_limit_bytes=32 << 20,           # sized for TB up to ~4K rows
        ),
        cost_estimate=cost,
    )(x, *param_args)

    return out[0, :B].reshape(B, 1)


def init_params(key, input_dim):
    """Deterministic init mimicking torch.nn.Linear (uniform +-1/sqrt(fan_in)).
    Weights stored as (in, out) = transpose of PyTorch's (out, in)."""
    dims = [(input_dim, 128), (128, 64), (64, 32), (32, 1)]
    params = {}
    for i, (fan_in, fan_out) in enumerate(dims, start=1):
        key, kw, kb = jax.random.split(key, 3)
        bound = 1.0 / jnp.sqrt(float(fan_in))
        params[f"w{i}"] = jax.random.uniform(
            kw, (fan_in, fan_out), jnp.float32, minval=-bound, maxval=bound)
        params[f"b{i}"] = jax.random.uniform(
            kb, (1, fan_out), jnp.float32, minval=-bound, maxval=bound)
    return params


def _reference_forward(x, params, compute_dtype=jnp.float32):
    """Pure-JAX reference (optionally bf16 matmul operands, f32 accumulation)."""
    cd = compute_dtype

    def dense(h, w, b):
        return jnp.dot(h.astype(cd), w.astype(cd),
                       preferred_element_type=jnp.float32) + b

    h = jnp.maximum(dense(x, params["w1"], params["b1"]), 0.0)
    h = jnp.maximum(dense(h, params["w2"], params["b2"]), 0.0)
    h = jnp.maximum(dense(h, params["w3"], params["b3"]), 0.0)
    z = jnp.dot(h, params["w4"], preferred_element_type=jnp.float32) + params["b4"]
    return jax.nn.sigmoid(z)


if __name__ == "__main__":
    key = jax.random.PRNGKey(0)
    key, kx1, kx2, kx3 = jax.random.split(key, 4)

    input_dim = 32
    params = init_params(key, input_dim)

    # Tiny batch: adaptive single 16-row tile (only 8 pad rows, no full-tile waste).
    x_small = jax.random.normal(kx1, (8, input_dim), dtype=jnp.float32)
    # Medium batch forced through the multi-tile 128-aligned path.
    x_med = jax.random.normal(kx2, (384, input_dim), dtype=jnp.float32)
    # Large batch under the default config: 2 grid steps of TB=2048, chunked fc4 epilogue.
    x_big = jax.random.normal(kx3, (4096, input_dim), dtype=jnp.float32)

    # f32 MXU path: must match the pure-JAX f32 reference tightly.
    out_f32 = jax.block_until_ready(
        nba_point_model_forward(x_small, params, use_bf16=False))
    ref_f32 = _reference_forward(x_small, params)
    assert out_f32.shape == (8, 1)
    assert jnp.allclose(out_f32, ref_f32, atol=1e-5, rtol=1e-5)

    # bf16 MXU path (default / fast): loose vs f32 ref, tight vs bf16 ref.
    out_bf16 = jax.block_until_ready(nba_point_model_forward(x_small, params))
    ref_bf16 = _reference_forward(x_small, params, compute_dtype=jnp.bfloat16)
    assert out_bf16.shape == (8, 1)
    assert jnp.allclose(out_bf16, ref_f32, atol=2e-2, rtol=2e-2)
    assert jnp.allclose(out_bf16, ref_bf16, atol=1e-3, rtol=1e-3)

    # Multi-tile grid: 384 rows with block_rows=128 -> 3 steps of 128 rows.
    out_med = jax.block_until_ready(
        nba_point_model_forward(x_med, params, block_rows=128))
    ref_med = _reference_forward(x_med, params)
    assert out_med.shape == (384, 1)
    assert jnp.allclose(out_med, ref_med, atol=2e-2, rtol=2e-2)

    # Default large-batch config: 2 parallel steps x TB=2048, chunked fc4 epilogue.
    out_big = jax.block_until_ready(nba_point_model_forward(x_big, params))
    ref_big = _reference_forward(x_big, params)
    assert out_big.shape == (4096, 1)
    assert jnp.allclose(out_big, ref_big, atol=2e-2, rtol=2e-2)

    print("KERNEL_OK")
</pallas_src>

<mosaic_0001>
module attributes {stable_mosaic.version = 11 : i64} {
  func.func @_mlp_kernel(%arg0: i32, %arg1: memref<16x32xf32, #tpu.memory_space<vmem>>, %arg2: memref<32x128xf32, #tpu.memory_space<vmem>>, %arg3: memref<1x128xf32, #tpu.memory_space<vmem>>, %arg4: memref<128x64xf32, #tpu.memory_space<vmem>>, %arg5: memref<1x64xf32, #tpu.memory_space<vmem>>, %arg6: memref<64x32xf32, #tpu.memory_space<vmem>>, %arg7: memref<1x32xf32, #tpu.memory_space<vmem>>, %arg8: memref<1x32xf32, #tpu.memory_space<vmem>>, %arg9: memref<1x1xf32, #tpu.memory_space<vmem>>, %arg10: memref<1x16xf32, #tpu.memory_space<vmem>>) attributes {dimension_semantics = [#tpu.dimension_semantics<parallel>], iteration_bounds = array<i64: 1>, scalar_prefetch = 0 : i64, scratch_operands = 0 : i64, tpu.core_type = #tpu.core_type<tc>, window_params = [{transform_indices = @transform_0, window_bounds = array<i64: 16, 32>}, {pipeline_mode = #tpu.pipeline_mode<synchronous>, transform_indices = @transform_1, window_bounds = array<i64: 32, 128>}, {pipeline_mode = #tpu.pipeline_mode<synchronous>, transform_indices = @transform_2, window_bounds = array<i64: 1, 128>}, {pipeline_mode = #tpu.pipeline_mode<synchronous>, transform_indices = @transform_3, window_bounds = array<i64: 128, 64>}, {pipeline_mode = #tpu.pipeline_mode<synchronous>, transform_indices = @transform_4, window_bounds = array<i64: 1, 64>}, {pipeline_mode = #tpu.pipeline_mode<synchronous>, transform_indices = @transform_5, window_bounds = array<i64: 64, 32>}, {pipeline_mode = #tpu.pipeline_mode<synchronous>, transform_indices = @transform_6, window_bounds = array<i64: 1, 32>}, {pipeline_mode = #tpu.pipeline_mode<synchronous>, transform_indices = @transform_7, window_bounds = array<i64: 1, 32>}, {pipeline_mode = #tpu.pipeline_mode<synchronous>, transform_indices = @transform_8, window_bounds = array<i64: 1, 1>}, {transform_indices = @transform_9, window_bounds = array<i64: 1, 16>}]} {
    %c0 = arith.constant 0 : index
    %c0_0 = arith.constant 0 : index
    %0 = vector.load %arg1[%c0, %c0_0] : memref<16x32xf32, #tpu.memory_space<vmem>>, vector<16x32xf32>
    %c0_1 = arith.constant 0 : index
    %c0_2 = arith.constant 0 : index
    %1 = vector.load %arg2[%c0_1, %c0_2] : memref<32x128xf32, #tpu.memory_space<vmem>>, vector<32x128xf32>
    %cst = arith.constant dense<0.000000e+00> : vector<16x128xf32>
    %2 = tpu.matmul %0, %1, %cst {dimension_numbers = #tpu.dot_dimension_numbers<[1], [0], [0], [1], [0, 0, 1, 1], [], []>} : vector<16x32xf32>, vector<32x128xf32>, vector<16x128xf32> -> vector<16x128xf32>
    %c0_3 = arith.constant 0 : index
    %c0_4 = arith.constant 0 : index
    %3 = vector.load %arg3[%c0_3, %c0_4] : memref<1x128xf32, #tpu.memory_space<vmem>>, vector<1x128xf32>
    %4 = vector.broadcast %3 : vector<1x128xf32> to vector<16x128xf32>
    %5 = arith.addf %2, %4 : vector<16x128xf32>
    %cst_5 = arith.constant 0.000000e+00 : f32
    %6 = vector.broadcast %cst_5 : f32 to vector<16x128xf32>
    %7 = arith.maximumf %5, %6 : vector<16x128xf32>
    %c0_6 = arith.constant 0 : index
    %c0_7 = arith.constant 0 : index
    %8 = vector.load %arg4[%c0_6, %c0_7] : memref<128x64xf32, #tpu.memory_space<vmem>>, vector<128x64xf32>
    %cst_8 = arith.constant dense<0.000000e+00> : vector<16x64xf32>
    %9 = tpu.matmul %7, %8, %cst_8 {dimension_numbers = #tpu.dot_dimension_numbers<[1], [0], [0], [1], [0, 0, 1, 1], [], []>} : vector<16x128xf32>, vector<128x64xf32>, vector<16x64xf32> -> vector<16x64xf32>
    %c0_9 = arith.constant 0 : index
    %c0_10 = arith.constant 0 : index
    %10 = vector.load %arg5[%c0_9, %c0_10] : memref<1x64xf32, #tpu.memory_space<vmem>>, vector<1x64xf32>
    %11 = vector.broadcast %10 : vector<1x64xf32> to vector<16x64xf32>
    %12 = arith.addf %9, %11 : vector<16x64xf32>
    %cst_11 = arith.constant 0.000000e+00 : f32
    %13 = vector.broadcast %cst_11 : f32 to vector<16x64xf32>
    %14 = arith.maximumf %12, %13 : vector<16x64xf32>
    %c0_12 = arith.constant 0 : index
    %c0_13 = arith.constant 0 : index
    %15 = vector.load %arg6[%c0_12, %c0_13] : memref<64x32xf32, #tpu.memory_space<vmem>>, vector<64x32xf32>
    %cst_14 = arith.constant dense<0.000000e+00> : vector<16x32xf32>
    %16 = tpu.matmul %14, %15, %cst_14 {dimension_numbers = #tpu.dot_dimension_numbers<[1], [0], [0], [1], [0, 0, 1, 1], [], []>} : vector<16x64xf32>, vector<64x32xf32>, vector<16x32xf32> -> vector<16x32xf32>
    %c0_15 = arith.constant 0 : index
    %c0_16 = arith.constant 0 : index
    %17 = vector.load %arg7[%c0_15, %c0_16] : memref<1x32xf32, #tpu.memory_space<vmem>>, vector<1x32xf32>
    %18 = vector.broadcast %17 : vector<1x32xf32> to vector<16x32xf32>
    %19 = arith.addf %16, %18 : vector<16x32xf32>
    %cst_17 = arith.constant 0.000000e+00 : f32
    %20 = vector.broadcast %cst_17 : f32 to vector<16x32xf32>
    %21 = arith.maximumf %19, %20 : vector<16x32xf32>
    %c0_18 = arith.constant 0 : index
    %c0_19 = arith.constant 0 : index
    %22 = vector.load %arg8[%c0_18, %c0_19] : memref<1x32xf32, #tpu.memory_space<vmem>>, vector<1x32xf32>
    %c0_20 = arith.constant 0 : index
    %c0_21 = arith.constant 0 : index
    %23 = vector.load %arg9[%c0_20, %c0_21] : memref<1x1xf32, #tpu.memory_space<vmem>>, vector<1x1xf32>
    %24 = vector.broadcast %22 : vector<1x32xf32> to vector<16x32xf32>
    %25 = arith.mulf %21, %24 : vector<16x32xf32>
    %cst_22 = arith.constant dense<0.000000e+00> : vector<16xf32>
    %26 = vector.multi_reduction <add>, %25, %cst_22 [1] : vector<16x32xf32> to vector<16xf32>
    %27 = vector.shape_cast %26 : vector<16xf32> to vector<1x16xf32>
    %28 = vector.broadcast %23 : vector<1x1xf32> to vector<1x16xf32>
    %29 = arith.addf %27, %28 : vector<1x16xf32>
    %30 = arith.negf %29 : vector<1x16xf32>
    %31 = math.exp %30 : vector<1x16xf32>
    %cst_23 = arith.constant 1.000000e+00 : f32
    %32 = vector.broadcast %cst_23 : f32 to vector<1x16xf32>
    %33 = arith.addf %32, %31 : vector<1x16xf32>
    %34 = arith.divf %32, %33 : vector<1x16xf32>
    %c0_24 = arith.constant 0 : index
    %c0_25 = arith.constant 0 : index
    %35 = vector.load %arg10[%c0_24, %c0_25] : memref<1x16xf32, #tpu.memory_space<vmem>>, vector<1x16xf32>
    tpu.vector_store %arg10[%c0_24, %c0_25], %34 {strides = array<i32>} : memref<1x16xf32, #tpu.memory_space<vmem>>, vector<1x16xf32>,
    return
  }
  func.func @transform_0(%arg0: i32) -> (i32, i32) {
    %c0_i32 = arith.constant 0 : i32
    %c0_i32_0 = arith.constant 0 : i32
    return %arg0, %c0_i32 : i32, i32
  }
  func.func @transform_1(%arg0: i32) -> (i32, i32) {
    %c0_i32 = arith.constant 0 : i32
    %c0_i32_0 = arith.constant 0 : i32
    %c0_i32_1 = arith.constant 0 : i32
    return %c0_i32, %c0_i32_0 : i32, i32
  }
  func.func @transform_2(%arg0: i32) -> (i32, i32) {
    %c0_i32 = arith.constant 0 : i32
    %c0_i32_0 = arith.constant 0 : i32
    %c0_i32_1 = arith.constant 0 : i32
    return %c0_i32, %c0_i32_0 : i32, i32
  }
  func.func @transform_3(%arg0: i32) -> (i32, i32) {
    %c0_i32 = arith.constant 0 : i32
    %c0_i32_0 = arith.constant 0 : i32
    %c0_i32_1 = arith.constant 0 : i32
    return %c0_i32, %c0_i32_0 : i32, i32
  }
  func.func @transform_4(%arg0: i32) -> (i32, i32) {
    %c0_i32 = arith.constant 0 : i32
    %c0_i32_0 = arith.constant 0 : i32
    %c0_i32_1 = arith.constant 0 : i32
    return %c0_i32, %c0_i32_0 : i32, i32
  }
  func.func @transform_5(%arg0: i32) -> (i32, i32) {
    %c0_i32 = arith.constant 0 : i32
    %c0_i32_0 = arith.constant 0 : i32
    %c0_i32_1 = arith.constant 0 : i32
    return %c0_i32, %c0_i32_0 : i32, i32
  }
  func.func @transform_6(%arg0: i32) -> (i32, i32) {
    %c0_i32 = arith.constant 0 : i32
    %c0_i32_0 = arith.constant 0 : i32
    %c0_i32_1 = arith.constant 0 : i32
    return %c0_i32, %c0_i32_0 : i32, i32
  }
  func.func @transform_7(%arg0: i32) -> (i32, i32) {
    %c0_i32 = arith.constant 0 : i32
    %c0_i32_0 = arith.constant 0 : i32
    %c0_i32_1 = arith.constant 0 : i32
    return %c0_i32, %c0_i32_0 : i32, i32
  }
  func.func @transform_8(%arg0: i32) -> (i32, i32) {
    %c0_i32 = arith.constant 0 : i32
    %c0_i32_0 = arith.constant 0 : i32
    %c0_i32_1 = arith.constant 0 : i32
    return %c0_i32, %c0_i32_0 : i32, i32
  }
  func.func @transform_9(%arg0: i32) -> (i32, i32) {
    %c0_i32 = arith.constant 0 : i32
    %c0_i32_0 = arith.constant 0 : i32
    return %c0_i32, %arg0 : i32, i32
  }
}

</mosaic_0001>

<bundles_post_ra>
// kernel: tpu_custom_call.1
= control target key start
LH: loop header
LB: loop body
LE: loop exit
PB: predicated region body
PF: predicated region fallthrough
CT: control target
= control target key end

     0   :  { %s709_s0 = inlined_call_operand.vmem [shape: f32[16,32], index: 0, kind: input, shape index: {}]   ;;  %s710_s1 = inlined_call_operand.vmem [shape: f32[32,128], index: 1, kind: input, shape index: {}]   ;;  %s711_s2 = inlined_call_operand.vmem [shape: f32[1,128], index: 2, kind: input, shape index: {}]   ;;  %s712_s3 = inlined_call_operand.vmem [shape: f32[128,64], index: 3, kind: input, shape index: {}]   ;;  %s713_s4 = inlined_call_operand.vmem [shape: f32[1,64], index: 4, kind: input, shape index: {}]   ;;  %s714_s5 = inlined_call_operand.vmem [shape: f32[64,32], index: 5, kind: input, shape index: {}]   ;;  %s715_s6 = inlined_call_operand.vmem [shape: f32[1,32], index: 6, kind: input, shape index: {}]   ;;  %s716_s7 = inlined_call_operand.vmem [shape: f32[1,32], index: 7, kind: input, shape index: {}]   ;;  %s717_s8 = inlined_call_operand.<no memory space> [shape: f32[1,1], index: 8, kind: input, shape index: {}]   ;;  %s718_s9 = inlined_call_operand.hbm [shape: f32[1,16], index: 9, kind: output, shape index: {}]  }
   0x1   :  { %v14_v0 = vstv %s717_s8 }
   0x2   :  { %15 = vst [vmem:[#allocation2] sm:$0x1] %v14_v0 }
   0x3   :  { %v40_v1 = vld [vmem:[%s710_s1 + $0x18] sm:$0xff]  ;;  %v39_v2 = vld [vmem:[%s710_s1 + $0x10] sm:$0xff]  ;;  %vm48_vm0 = vcmask 261120   ;;  %v35_v3 = vld [vmem:[%s709_s0] sm:$0xff] }
   0x4   :  { %446 = vmatprep.subr.mxu0 %v40_v1  ;;  %v38_v4 = vld [vmem:[%s710_s1 + $0x8] sm:$0xff]  ;;  %454 = vmatprep.mubr.msk.f32.mxu0 %vm48_vm0, %v35_v3  ;;  %v147_v5 = vld [vmem:[%s712_s3 + $0x78] sm:$0xff]  ;;  %v146_v6 = vld [vmem:[%s712_s3 + $0x70] sm:$0xff] }
   0x5   :  { %447 = vmatpush3.msra.mxu0 %v40_v1  ;;  %457 = vmatprep.subr.mxu1 %v147_v5  ;;  %v37_v7 = vld [vmem:[%s710_s1] sm:$0xff]  ;;  %v145_v8 = vld [vmem:[%s712_s3 + $0x68] sm:$0xff] }
   0x6   :  { %448 = vmatprep.subr.mxu0 %v39_v2  ;;  %458 = vmatpush3.msra.mxu1 %v147_v5  ;;  %v36_v9 = vld [vmem:[%s709_s0 + $0x8] sm:$0xff]  ;;  %v144_v10 = vld [vmem:[%s712_s3 + $0x60] sm:$0xff] }
   0x7   :  { %449 = vmatpush3.msra.mxu0 %v39_v2  ;;  %459 = vmatprep.subr.mxu1 %v146_v6 }
   0x8   :  { %450 = vmatprep.subr.mxu0 %v38_v4  ;;  %460 = vmatpush3.msra.mxu1 %v146_v6 }
   0x9   :  { %451 = vmatpush3.msra.mxu0 %v38_v4 }
   0xa   :  { %16 = vsyncpa [#allocation4], 0  ;;  %452 = vmatprep.subr.mxu0 %v37_v7  ;;  %461 = vmatprep.subr.mxu1 %v145_v8  ;;  %v143_v11 = vld [vmem:[%s712_s3 + $0x58] sm:$0xff]  ;;  %v142_v12 = vld [vmem:[%s712_s3 + $0x50] sm:$0xff]  ;;  %vm247_vm1 = vcmask 523264   ;;  %v545_v46 = vmov 0   ;;  %v352_v59 = vlaneseq }
   0xb   :  { %453 = vmatpush3.msra.mxu0 %v37_v7  ;;  %462 = vmatpush3.msra.mxu1 %v145_v8  ;;  %v141_v13 = vld [vmem:[%s712_s3 + $0x48] sm:$0xff]  ;;  %v140_v14 = vld [vmem:[%s712_s3 + $0x40] sm:$0xff]  ;;  %v139_v15 = vld [vmem:[%s712_s3 + $0x38] sm:$0xff]  ;;  %vm383_vm2 = vcmask 130112   ;;  %vm386_vm3 = vcmask 122880  }
   0xc   :  { %455 = vmatmul.mubr.msk.f32.vlgmr.msra.gmra.mxu0 %vm48_vm0, %v36_v9  ;;  %463 = vmatprep.subr.mxu1 %v144_v10  ;;  %v138_v16 = vld [vmem:[%s712_s3 + $0x30] sm:$0xff]  ;;  %v137_v17 = vld [vmem:[%s712_s3 + $0x28] sm:$0xff]  ;;  %v136_v18 = vld [vmem:[%s712_s3 + $0x20] sm:$0xff]  ;;  %v353_v60 = vshrl.u32 %v352_v59, 7 }
   0xd   :  { %464 = vmatpush3.msra.mxu1 %v144_v10  ;;  %v135_v19 = vld [vmem:[%s712_s3 + $0x18] sm:$0xff]  ;;  %v134_v20 = vld [vmem:[%s712_s3 + $0x10] sm:$0xff]  ;;  %v133_v21 = vld [vmem:[%s712_s3 + $0x8] sm:$0xff]  ;;  %513 = vset.pattern.permute.xlu1 %v545_v46  ;;  %v373_v10 = vand.u32 127, %v352_v59 }
   0xe   :  { %465 = vmatprep.subr.mxu1 %v143_v11  ;;  %v132_v22 = vld [vmem:[%s712_s3] sm:$0xff]  ;;  %v239_v23 = vld [vmem:[%s714_s5 + $0x38] sm:$0xff]  ;;  %v238_v24 = vld [vmem:[%s714_s5 + $0x30] sm:$0xff]  ;;  %514 = vset.pattern.permute.xlu0 %v545_v46  ;;  %v354_v61 = vsub.s32 0, %v353_v60 }
   0xf   :  { %466 = vmatpush3.msra.mxu1 %v143_v11  ;;  %492 = vmatprep.subr.mxu0 %v239_v23  ;;  %v237_v25 = vld [vmem:[%s714_s5 + $0x28] sm:$0xff]  ;;  %v236_v26 = vld [vmem:[%s714_s5 + $0x20] sm:$0xff]  ;;  %v235_v34 = vld [vmem:[%s714_s5 + $0x18] sm:$0xff]  ;;  %v378_v11 = vadd.s32 4294967288, %v373_v10 }
  0x10   :  { %467 = vmatprep.subr.mxu1 %v142_v12  ;;  %493 = vmatpush3.msra.mxu0 %v239_v23  ;;  %v402_v27 = vld [vmem:[%s711_s2] ss:$0 sm:$0xff]  ;;  %v234_v35 = vld [vmem:[%s714_s5 + $0x10] sm:$0xff]  ;;  %v233_v36 = vld [vmem:[%s714_s5 + $0x8] sm:$0xff] }
  0x11   :  { %468 = vmatpush3.msra.mxu1 %v142_v12  ;;  %494 = vmatprep.subr.mxu0 %v238_v24  ;;  %v232_v37 = vld [vmem:[%s714_s5] sm:$0xff]  ;;  %v376_v12 = vsub.s32 %v373_v10, %v353_v60 }
  0x12   :  { %469 = vmatprep.subr.mxu1 %v141_v13  ;;  %495 = vmatpush3.msra.mxu0 %v238_v24  ;;  %v405_v38 = vld [vmem:[%s713_s4] ss:$0 sm:$0xff] }
  0x13   :  { %470 = vmatpush3.msra.mxu1 %v141_v13  ;;  %496 = vmatprep.subr.mxu0 %v237_v25  ;;  %v332_v45 = vld [vmem:[#allocation2] sm:$0x1]  ;;  %v381_v13 = vsub.s32 %v378_v11, %v353_v60 }
  0x14   :  { %471 = vmatprep.subr.mxu1 %v140_v14  ;;  %497 = vmatpush3.msra.mxu0 %v237_v25  ;;  %v406_v47 = vld [vmem:[%s715_s6] ss:$0 sm:$0xff]  ;;  %s546_s6 = smov [#allocation3]  }
  0x15   :  { %472 = vmatpush3.msra.mxu1 %v140_v14  ;;  %498 = vmatprep.subr.mxu0 %v236_v26  ;;  %v409_v54 = vld [vmem:[%s716_s7] ss:$0 sm:$0xff]  ;;  %s394_s7 = sshll.u32 %s546_s6, 4  ;;  %s395_s7 = int_to_ptr.vmem [resolvable:$true] %s394_s7 }
  0x16   :  { %473 = vmatprep.subr.mxu1 %v139_v15  ;;  %499 = vmatpush3.msra.mxu0 %v236_v26  ;;  %s523_s26 = scalar_lea.vmem %s395_s7, 16  ;;  %s527_s27 = scalar_lea.vmem %s395_s7, 32 }
  0x17   :  { %474 = vmatpush3.msra.mxu1 %v139_v15  ;;  %500 = vmatprep.subr.mxu0 %v235_v34  ;;  %p524_p0 = scmp.ne.s32.totalorder %s395_s7, %s523_s26  ;;  %p528_p1 = scmp.lt.s32.totalorder %s395_s7, %s395_s7 }
  0x18   :  { %475 = vmatprep.subr.mxu1 %v138_v16  ;;  %501 = vmatpush3.msra.mxu0 %v235_v34  ;;  %p529_p2 = scmp.lt.s32.totalorder %s527_s27, %s523_s26 }
  0x19   :  { %476 = vmatpush3.msra.mxu1 %v138_v16  ;;  %502 = vmatprep.subr.mxu0 %v234_v35 }
  0x1a   :  { %477 = vmatprep.subr.mxu1 %v137_v17  ;;  %503 = vmatpush3.msra.mxu0 %v234_v35  ;;  %p530_p3 = por %p529_p2, %p528_p1 }
  0x1b   :  { %478 = vmatpush3.msra.mxu1 %v137_v17  ;;  %504 = vmatprep.subr.mxu0 %v233_v36 }
  0x1c   :  { %479 = vmatprep.subr.mxu1 %v136_v18  ;;  %505 = vmatpush3.msra.mxu0 %v233_v36  ;;  %p531_p4 = pnand %p530_p3, %p524_p0 }
  0x1d   :  { %480 = vmatpush3.msra.mxu1 %v136_v18  ;;  %506 = vmatprep.subr.mxu0 %v232_v37 }
  0x1e   :  { %481 = vmatprep.subr.mxu1 %v135_v19  ;;  %507 = vmatpush3.msra.mxu0 %v232_v37 }
  0x1f   :  { %482 = vmatpush3.msra.mxu1 %v135_v19  ;;  %349 = vperm.xlu1 %513, %v332_v45  }
  0x20   :  { %483 = vmatprep.subr.mxu1 %v134_v20 }
  0x21   :  { %484 = vmatpush3.msra.mxu1 %v134_v20 }
  0x22   :  { %485 = vmatprep.subr.mxu1 %v133_v21 }
  0x23   :  { %486 = vmatpush3.msra.mxu1 %v133_v21 }
  0x24   :  { %487 = vmatprep.subr.mxu1 %v132_v22 }
  0x25   :  { %488 = vmatpush3.msra.mxu1 %v132_v22 }
  0x9a   :  { %v350_v62 = vpop.permute.xlu1 %349 }
  0x9b   :  { %v355_v63 = vrot.slane %v350_v62, %v354_v61 }
  0xcc   :  { %v456_v28 = vpop.f32.mrf.mxu0 }
  0xcd   :  { %v127_v29 = vadd.f32 %v456_v28, %v402_v27 }
  0xce   :  { %v121_v30 = vpop.f32.mrf.mxu0 }
  0xcf   :  { %v122_v31 = vadd.f32 %v402_v27, %v121_v30  ;;  %v131_v33 = vmax.f32 %v127_v29, 0.0 }
  0xd1   :  { %v130_v32 = vmax.f32 %v122_v31, 0.0 }
  0xd3   :  { %489 = vmatprep.mubr.f32.mxu1 %v130_v32 }
  0xd4   :  { %490 = vmatmul.mubr.f32.vlgmr.msra.gmra.mxu1 %v131_v33 }
 0x194   :  { %v491_v39 = vpop.f32.mrf.mxu1 }
 0x195   :  { %v227_v40 = vadd.f32 %v491_v39, %v405_v38 }
 0x196   :  { %v221_v41 = vpop.f32.mrf.mxu1 }
 0x197   :  { %v222_v42 = vadd.f32 %v405_v38, %v221_v41  ;;  %v231_v44 = vmax.f32 %v227_v40, 0.0 }
 0x199   :  { %v230_v43 = vmax.f32 %v222_v42, 0.0 }
 0x19b   :  { %508 = vmatprep.mubr.msk.f32.mxu0 %vm247_vm1, %v230_v43 }
 0x19c   :  { %509 = vmatmul.mubr.msk.f32.vlgmr.msra.gmra.mxu0 %vm247_vm1, %v231_v44 }
 0x25c   :  { %v510_v48 = vpop.f32.mrf.mxu0 }
 0x25d   :  { %v326_v49 = vadd.f32 %v510_v48, %v406_v47 }
 0x25e   :  { %v320_v50 = vpop.f32.mrf.mxu0 }
 0x25f   :  { %v321_v51 = vadd.f32 %v406_v47, %v320_v50  ;;  %v330_v52 = vmax.f32 %v326_v49, 0.0 }
 0x261   :  { %v329_v53 = vmax.f32 %v321_v51, 0.0  ;;  %v340_v57 = vmul.f32 %v409_v54, %v330_v52 }
 0x263   :  { %v339_v55 = vmul.f32 %v409_v54, %v329_v53  ;;  %v344_v58 = vsel %vm48_vm0, %v340_v57, 0.0 }
 0x265   :  { %v341_v56 = vsel %vm48_vm0, %v339_v55, 0.0 }
 0x266   :  { %342 = vadd.xlane.f32.xlu0 %v341_v56 }
 0x26a   :  { %345 = vadd.xlane.f32.xlu0 %v344_v58 }
 0x2ef   :  { %v343_v0 = vpop.xlane.xlu0 %342 }
 0x2f0   :  { %v356_v1 = vadd.f32 %v355_v63, %v343_v0 }
 0x2f2   :  { %v410_v2 = vmul.f32 -1.442695, %v356_v1 }
 0x2f3   :  { %v346_v3 = vpop.xlane.xlu0 %345 }
 0x2f4   :  { %515 = vpow2.f32 %v410_v2  ;;  %v357_v4 = vadd.f32 %v355_v63, %v346_v3 }
 0x2f6   :  { %v411_v5 = vmul.f32 -1.442695, %v357_v4 }
 0x2f8   :  { %517 = vpow2.f32 %v411_v5 }
 0x301   :  { %v516_v6 = vpop.eup %515 }
 0x302   :  { %v364_v7 = vadd.f32 1.0, %v516_v6 }
 0x304   :  { %519 = vrcp.f32 %v364_v7 }
 0x305   :  { %v518_v8 = vpop.eup %517 }
 0x306   :  { %v365_v9 = vadd.f32 1.0, %v518_v8 }
 0x308   :  { %521 = vrcp.f32 %v365_v9 }
 0x311   :  { %v520_v14 = vpop.eup %519 }
 0x312   :  { %v377_v16 = vrot.slane %v520_v14, %v376_v12 }
 0x315   :  { %v522_v15 = vpop.eup %521 }
 0x316   :  { %v382_v17 = vrot.slane %v522_v15, %v381_v13 }
 0x318   :  { %v384_v18 = vsel %vm383_vm2, %v382_v17, %v377_v16 }
 0x319   :  { %387 = vst.msk [vmem:[#allocation3] sm:$0x1] %vm386_vm3, %v384_v18 }
 0x31a   :  { %534 = shalt.err (!%p531_p4)
}
 0x31b   :  { %397 = dma.vmem_to_hbm [thread:$0]  %s395_s7, 16, %s718_s9, [#allocation4]  }
 0x31c   :  { %543 = dma.done.wait [#allocation4], 16  }
 0x31d   :  { %544 = vsyncadd [#allocation4], 4294967280 }
 0x31e   :  { %401 = vsyncpa [#allocation4], 1 }

</bundles_post_ra>
